<compile_context>
chip_gen: v7x
topology: tpu7x:2x2x1
jax: 0.10.0
libtpu: 0.0.40
codegen_flags: <defaults>
</compile_context>

<pallas_src>
import functools
import math

import jax
import jax.numpy as jnp
from jax.experimental import pallas as pl
from jax.experimental.pallas import tpu as pltpu


# ----------------------------------------------------------------------------- helpers
def _cdiv(a, b):
    return -(-a // b)


def _round_up(a, m):
    return _cdiv(a, m) * m


def _padded_plane_elems(h, w, itemsize):
    """Elements one (h, w) plane occupies in VMEM after Mosaic tile padding:
    sublanes round up to 8/16/32 (f32/bf16/int8), lanes round up to 128."""
    sub = max(8, 32 // max(1, itemsize))
    return _round_up(h, sub) * _round_up(w, 128)


def _vmem_budget():
    """(per-step target bytes, vmem_limit_bytes) chosen per TPU generation."""
    cap = None
    get_info = getattr(pltpu, "get_tpu_info", None)
    if get_info is not None:
        try:
            cap = getattr(get_info(), "vmem_capacity_bytes", None)
        except Exception:
            cap = None
    if not cap:
        cap = 64 << 20                      # conservative default (v7x-sized VMEM)
    if cap >= (100 << 20):                  # v5e / v6e: 128 MiB physical VMEM
        return 16 << 20, 96 << 20
    return 8 << 20, 48 << 20                # v7x: 64 MiB physical VMEM


def _choose_gb(G, bytes_per_g, target_bytes, min_steps_soft=4):
    """Planes per grid step: as big as the per-step VMEM target allows, but
    with a HARD guarantee of >= 2 grid steps whenever G > 1 (so v7x's two
    TensorCores both get work) and a soft preference for >= 4 steps while the
    block stays >= ~1 MiB (amortizes the ~0.35us per-step overhead)."""
    gb = max(1, min(G, target_bytes // max(1, bytes_per_g)))
    if G > 1:
        gb = min(gb, max(1, G // 2))        # hard: at least 2 grid steps
    while gb > 1 and _cdiv(G, gb) < min_steps_soft and gb * bytes_per_g > (1 << 20):
        gb = _cdiv(gb, 2)                   # soft: prefer >= 4 steps
    return gb


# ----------------------------------------------------------------------------- kernel
def _spheric_pad_kernel(x_ref, o_ref, *, T, H, W, left_w,
                        pad_right, pad_top, pad_bottom, pad_front, pad_back):
    """Pads one (Gb, T, H, W) block into (Gb, T_out, H_out, W_out).

    azimuth (lane axis)    : circular wrap -> three column-region stores
    elevation (sublane)    : reflect       -> per-row halo bands
    time (major axis)      : replicate     -> halo planes re-use the boundary
                                              input plane

    Every store reads from x_ref (never from o_ref), so there is no
    read-after-write chain on the output block and the LLO scheduler is free
    to interleave every halo store with the core copy and the write-back DMA.
    """
    W_out = left_w + W + pad_right

    def wrap_store(dst_t, dst_h, src_t, src_h):
        # Circular azimuth wrap for one (time band, row band) pair.
        # left_w == W when pad_left == 0, reproducing PyTorch's `x[..., -0:]`
        # full-width quirk.
        o_ref[:, dst_t, dst_h, 0:left_w] = x_ref[:, src_t, src_h, W - left_w:W]
        o_ref[:, dst_t, dst_h, left_w:left_w + W] = x_ref[:, src_t, src_h, :]
        if pad_right > 0:
            o_ref[:, dst_t, dst_h, left_w + W:W_out] = x_ref[:, src_t, src_h, 0:pad_right]

    # Output time bands and the input time band each replicates.
    time_bands = [(slice(pad_front, pad_front + T), slice(0, T))]
    for f in range(pad_front):                      # front halo planes <- plane 0
        time_bands.append((slice(f, f + 1), slice(0, 1)))
    for b in range(pad_back):                       # back halo planes <- plane T-1
        t = pad_front + T + b
        time_bands.append((slice(t, t + 1), slice(T - 1, T)))

    for dst_t, src_t in time_bands:
        # Core elevation rows.
        wrap_store(dst_t, slice(pad_top, pad_top + H), src_t, slice(0, H))
        # Reflected top rows: output row i <- input row (pad_top - i).
        # (Pads are typically 1-3 rows, so per-row bands are effectively the
        #  same as a flipped band copy while avoiding a lax.rev lowering.)
        for i in range(pad_top):
            wrap_store(dst_t, slice(i, i + 1), src_t,
                       slice(pad_top - i, pad_top - i + 1))
        # Reflected bottom rows: output row pad_top+H+k <- input row H-2-k.
        for k in range(pad_bottom):
            wrap_store(dst_t, slice(pad_top + H + k, pad_top + H + k + 1),
                       src_t, slice(H - 2 - k, H - 1 - k))


# ----------------------------------------------------------------------------- reference
def _ref_spheric_pad(x, pad):
    """Pure-JAX reference reproducing the PyTorch forward (also the tiny-input path)."""
    if len(pad) == 4:
        pL, pR, pT, pB = pad
        pF, pBk = 0, 0
    else:
        pL, pR, pT, pB, pF, pBk = pad
    if pF > 0 or pBk > 0:
        cfg = [(0, 0)] * (x.ndim - 3) + [(pF, pBk), (0, 0), (0, 0)]
        x = jnp.pad(x, cfg, mode="edge")
    cfg = [(0, 0)] * (x.ndim - 2) + [(pT, pB), (0, 0)]
    x = jnp.pad(x, cfg, mode="reflect")
    left = x if pL == 0 else x[..., x.shape[-1] - pL:]
    right = x[..., :pR]
    return jnp.concatenate([left, x, right], axis=-1)


# ----------------------------------------------------------------------------- wrapper
def spheric_pad(x, pad, *, use_pallas=None, _force_time_split=False):
    """Pallas implementation of SphericPad.forward.

    use_pallas: True forces the Pallas kernel, False forces the fused-XLA path,
    None (default) auto-dispatches on problem size (Pallas for >= 256 KiB moved).
    _force_time_split: test hook that forces the time-split fallback path.
    """
    if len(pad) == 4:
        pL, pR, pT, pB = pad
        pF, pBk = 0, 0
    elif len(pad) == 6:
        pL, pR, pT, pB, pF, pBk = pad
    else:
        raise Exception("Expect 4 or 6 values for padding "
                        "(padLeft, padRight, padTop, padBottom, [padFront, padBack])")

    H, W = x.shape[-2], x.shape[-1]
    assert W >= pR and W >= pL, (
        "Padding size should be less than the corresponding input dimension "
        "for the azimuth axis")
    assert pT < H and pB < H, "Reflect padding must be smaller than elevation size"
    if pT > 0 or pB > 0:
        assert H >= 2, "Reflect padding requires at least 2 elevation rows"

    has_time_pad = (pF > 0) or (pBk > 0)
    if has_time_pad:
        assert x.ndim >= 3, "Time (replicate) padding requires a time axis at dim -3"
        lead = x.shape[:-3]
        T = x.shape[-3]
    else:
        lead = x.shape[:-2]
        T = 1
    G = int(math.prod(lead)) if lead else 1

    left_w = W if pL == 0 else pL            # mirrors torch's `x[..., -0:]` quirk
    T_out = T + pF + pBk
    H_out = H + pT + pB
    W_out = left_w + W + pR

    itemsize = jnp.dtype(x.dtype).itemsize
    in_bytes = G * T * H * W * itemsize
    out_bytes = G * T_out * H_out * W_out * itemsize
    if use_pallas is None:
        use_pallas = (in_bytes + out_bytes) >= (256 << 10)
    if not use_pallas:
        return _ref_spheric_pad(x, pad)

    per_step_target, vmem_limit = _vmem_budget()
    x4 = x.reshape(G, T, H, W)
    cost = pl.CostEstimate(flops=0, transcendentals=0,
                           bytes_accessed=in_bytes + out_bytes)

    # VMEM footprint per G-plane, INCLUDING Mosaic tile padding of the last two
    # block dims (for W like 16/20/34 the padded footprint is 4-8x H*W).
    bytes_per_g = (T * _padded_plane_elems(H, W, itemsize)
                   + T_out * _padded_plane_elems(H_out, W_out, itemsize)) * itemsize
    Gb = _choose_gb(G, bytes_per_g, per_step_target)
    fits = (2 * Gb * bytes_per_g + (2 << 20)) <= vmem_limit   # double-buffered + slack

    if fits and not _force_time_split:
        # ---------------- main path: Gb planes per step, full T folded in ----------------
        kernel = functools.partial(
            _spheric_pad_kernel, T=T, H=H, W=W, left_w=left_w,
            pad_right=pR, pad_top=pT, pad_bottom=pB, pad_front=pF, pad_back=pBk)
        out4 = pl.pallas_call(
            kernel,
            out_shape=jax.ShapeDtypeStruct((G, T_out, H_out, W_out), x.dtype),
            grid=(_cdiv(G, Gb),),
            in_specs=[pl.BlockSpec((Gb, T, H, W), lambda g: (g, 0, 0, 0))],
            out_specs=pl.BlockSpec((Gb, T_out, H_out, W_out), lambda g: (g, 0, 0, 0)),
            compiler_params=pltpu.CompilerParams(
                dimension_semantics=("parallel",),
                vmem_limit_bytes=vmem_limit),
            cost_estimate=cost,
        )(x4)
    else:
        # ---------------- fallback: split along the output time axis ----------------
        # One output time plane per grid step; the replicate time padding is
        # realized purely by the clamped INPUT index_map (boundary planes are
        # re-read for the halo steps), so the kernel only does wrap + reflect.
        plane_bytes = (_padded_plane_elems(H, W, itemsize)
                       + _padded_plane_elems(H_out, W_out, itemsize)) * itemsize
        Gb2 = _choose_gb(G, plane_bytes, per_step_target)
        fits2 = (2 * Gb2 * plane_bytes + (2 << 20)) <= vmem_limit
        if not fits2:
            # TODO(synk): add an H/W-split path for single planes that exceed VMEM.
            return _ref_spheric_pad(x, pad)

        kernel = functools.partial(
            _spheric_pad_kernel, T=1, H=H, W=W, left_w=left_w,
            pad_right=pR, pad_top=pT, pad_bottom=pB, pad_front=0, pad_back=0)

        def in_idx(g, t):
            tt = jnp.maximum(jnp.minimum(t - pF, T - 1), 0)
            return (g, tt, 0, 0)

        out4 = pl.pallas_call(
            kernel,
            out_shape=jax.ShapeDtypeStruct((G, T_out, H_out, W_out), x.dtype),
            grid=(_cdiv(G, Gb2), T_out),
            in_specs=[pl.BlockSpec((Gb2, 1, H, W), in_idx)],
            out_specs=pl.BlockSpec((Gb2, 1, H_out, W_out), lambda g, t: (g, t, 0, 0)),
            compiler_params=pltpu.CompilerParams(
                dimension_semantics=("parallel", "parallel"),
                vmem_limit_bytes=vmem_limit),
            cost_estimate=cost,
        )(x4)

    if has_time_pad:
        return out4.reshape(lead + (T_out, H_out, W_out))
    return out4.reshape(lead + (H_out, W_out))


# ----------------------------------------------------------------------------- tests
if __name__ == "__main__":
    # SphericPad has no learnable parameters, so nothing to initialize.
    # use_pallas=True forces the kernel even at these small test sizes.

    # Case 1: 4-value padding on an NCHW input.
    x4 = jax.random.normal(jax.random.PRNGKey(0), (2, 4, 16, 16), dtype=jnp.float32)
    pad4 = (2, 2, 1, 1)  # (left, right, top, bottom)
    out4 = jax.block_until_ready(spheric_pad(x4, pad4, use_pallas=True))
    ref4 = _ref_spheric_pad(x4, pad4)
    assert out4.shape == ref4.shape == (2, 4, 18, 20), (out4.shape, ref4.shape)
    assert jnp.allclose(out4, ref4), "mismatch for 4D / 4-value padding"

    # Case 2: 6-value padding (time replicate pad) on an NCTHW input.
    x5 = jax.random.normal(jax.random.PRNGKey(1), (2, 3, 4, 8, 16), dtype=jnp.float32)
    pad6 = (2, 2, 1, 1, 1, 1)  # (left, right, top, bottom, front, back)
    out5 = jax.block_until_ready(spheric_pad(x5, pad6, use_pallas=True))
    ref5 = _ref_spheric_pad(x5, pad6)
    assert out5.shape == ref5.shape == (2, 3, 6, 10, 20), (out5.shape, ref5.shape)
    assert jnp.allclose(out5, ref5), "mismatch for 5D / 6-value padding"

    # Case 3: asymmetric pads on both axes (locks in axis-order commutativity).
    pad_asym = (3, 1, 2, 1)
    out_a = jax.block_until_ready(spheric_pad(x4, pad_asym, use_pallas=True))
    ref_a = _ref_spheric_pad(x4, pad_asym)
    assert out_a.shape == ref_a.shape == (2, 4, 19, 20), (out_a.shape, ref_a.shape)
    assert jnp.allclose(out_a, ref_a), "mismatch for asymmetric padding"

    # Case 4: padLeft == 0 reproduces PyTorch's `x[..., -0:]` full-width quirk.
    pad_quirk = (0, 2, 1, 1)
    out_q = jax.block_until_ready(spheric_pad(x4, pad_quirk, use_pallas=True))
    ref_q = _ref_spheric_pad(x4, pad_quirk)
    assert out_q.shape == ref_q.shape == (2, 4, 18, 34), (out_q.shape, ref_q.shape)
    assert jnp.allclose(out_q, ref_q), "mismatch for padLeft == 0 quirk"

    # Case 5: G not divisible by Gb (partial last grid block) — G=5 -> Gb=2.
    x_odd = jax.random.normal(jax.random.PRNGKey(2), (5, 1, 16, 16), dtype=jnp.float32)
    pad_o = (1, 1, 1, 1)
    out_o = jax.block_until_ready(spheric_pad(x_odd, pad_o, use_pallas=True))
    ref_o = _ref_spheric_pad(x_odd, pad_o)
    assert out_o.shape == ref_o.shape == (5, 1, 18, 18), (out_o.shape, ref_o.shape)
    assert jnp.allclose(out_o, ref_o), "mismatch for partial last grid block"

    # Case 6: time-split fallback path (clamped time index_map) on the 5-D input.
    out_t = jax.block_until_ready(
        spheric_pad(x5, pad6, use_pallas=True, _force_time_split=True))
    assert out_t.shape == ref5.shape, (out_t.shape, ref5.shape)
    assert jnp.allclose(out_t, ref5), "mismatch for time-split fallback path"

    print("KERNEL_OK")
</pallas_src>

<mosaic_0001>
module attributes {stable_mosaic.version = 11 : i64} {
  func.func @_spheric_pad_kernel(%arg0: i32, %arg1: memref<4x1x16x16xf32, #tpu.memory_space<vmem>>, %arg2: memref<4x1x18x20xf32, #tpu.memory_space<vmem>>) attributes {dimension_semantics = [#tpu.dimension_semantics<parallel>], iteration_bounds = array<i64: 2>, scalar_prefetch = 0 : i64, scratch_operands = 0 : i64, tpu.core_type = #tpu.core_type<tc>, window_params = [{transform_indices = @transform_0, window_bounds = array<i64: 4, 1, 16, 16>}, {transform_indices = @transform_1, window_bounds = array<i64: 4, 1, 18, 20>}]} {
    %c0 = arith.constant 0 : index
    %c0_0 = arith.constant 0 : index
    %c0_1 = arith.constant 0 : index
    %c14 = arith.constant 14 : index
    %0 = vector.load %arg1[%c0, %c0_0, %c0_1, %c14] : memref<4x1x16x16xf32, #tpu.memory_space<vmem>>, vector<4x1x16x2xf32>
    %c0_2 = arith.constant 0 : index
    %c0_3 = arith.constant 0 : index
    %c1 = arith.constant 1 : index
    %c0_4 = arith.constant 0 : index
    %1 = vector.load %arg2[%c0_2, %c0_3, %c1, %c0_4] : memref<4x1x18x20xf32, #tpu.memory_space<vmem>>, vector<4x1x16x2xf32>
    tpu.vector_store %arg2[%c0_2, %c0_3, %c1, %c0_4], %0 {strides = array<i32>} : memref<4x1x18x20xf32, #tpu.memory_space<vmem>>, vector<4x1x16x2xf32>,
    %c0_5 = arith.constant 0 : index
    %c0_6 = arith.constant 0 : index
    %c0_7 = arith.constant 0 : index
    %c0_8 = arith.constant 0 : index
    %2 = vector.load %arg1[%c0_5, %c0_6, %c0_7, %c0_8] : memref<4x1x16x16xf32, #tpu.memory_space<vmem>>, vector<4x1x16x16xf32>
    %c0_9 = arith.constant 0 : index
    %c0_10 = arith.constant 0 : index
    %c1_11 = arith.constant 1 : index
    %c2 = arith.constant 2 : index
    %3 = vector.load %arg2[%c0_9, %c0_10, %c1_11, %c2] : memref<4x1x18x20xf32, #tpu.memory_space<vmem>>, vector<4x1x16x16xf32>
    tpu.vector_store %arg2[%c0_9, %c0_10, %c1_11, %c2], %2 {strides = array<i32>} : memref<4x1x18x20xf32, #tpu.memory_space<vmem>>, vector<4x1x16x16xf32>,
    %c0_12 = arith.constant 0 : index
    %c0_13 = arith.constant 0 : index
    %c0_14 = arith.constant 0 : index
    %c0_15 = arith.constant 0 : index
    %4 = vector.load %arg1[%c0_12, %c0_13, %c0_14, %c0_15] : memref<4x1x16x16xf32, #tpu.memory_space<vmem>>, vector<4x1x16x2xf32>
    %c0_16 = arith.constant 0 : index
    %c0_17 = arith.constant 0 : index
    %c1_18 = arith.constant 1 : index
    %c18 = arith.constant 18 : index
    %5 = vector.load %arg2[%c0_16, %c0_17, %c1_18, %c18] : memref<4x1x18x20xf32, #tpu.memory_space<vmem>>, vector<4x1x16x2xf32>
    tpu.vector_store %arg2[%c0_16, %c0_17, %c1_18, %c18], %4 {strides = array<i32>} : memref<4x1x18x20xf32, #tpu.memory_space<vmem>>, vector<4x1x16x2xf32>,
    %c0_19 = arith.constant 0 : index
    %c0_20 = arith.constant 0 : index
    %c1_21 = arith.constant 1 : index
    %c14_22 = arith.constant 14 : index
    %6 = vector.load %arg1[%c0_19, %c0_20, %c1_21, %c14_22] : memref<4x1x16x16xf32, #tpu.memory_space<vmem>>, vector<4x1x1x2xf32>
    %c0_23 = arith.constant 0 : index
    %c0_24 = arith.constant 0 : index
    %c0_25 = arith.constant 0 : index
    %c0_26 = arith.constant 0 : index
    %7 = vector.load %arg2[%c0_23, %c0_24, %c0_25, %c0_26] : memref<4x1x18x20xf32, #tpu.memory_space<vmem>>, vector<4x1x1x2xf32>
    tpu.vector_store %arg2[%c0_23, %c0_24, %c0_25, %c0_26], %6 {strides = array<i32>} : memref<4x1x18x20xf32, #tpu.memory_space<vmem>>, vector<4x1x1x2xf32>,
    %c0_27 = arith.constant 0 : index
    %c0_28 = arith.constant 0 : index
    %c1_29 = arith.constant 1 : index
    %c0_30 = arith.constant 0 : index
    %8 = vector.load %arg1[%c0_27, %c0_28, %c1_29, %c0_30] : memref<4x1x16x16xf32, #tpu.memory_space<vmem>>, vector<4x1x1x16xf32>
    %c0_31 = arith.constant 0 : index
    %c0_32 = arith.constant 0 : index
    %c0_33 = arith.constant 0 : index
    %c2_34 = arith.constant 2 : index
    %9 = vector.load %arg2[%c0_31, %c0_32, %c0_33, %c2_34] : memref<4x1x18x20xf32, #tpu.memory_space<vmem>>, vector<4x1x1x16xf32>
    tpu.vector_store %arg2[%c0_31, %c0_32, %c0_33, %c2_34], %8 {strides = array<i32>} : memref<4x1x18x20xf32, #tpu.memory_space<vmem>>, vector<4x1x1x16xf32>,
    %c0_35 = arith.constant 0 : index
    %c0_36 = arith.constant 0 : index
    %c1_37 = arith.constant 1 : index
    %c0_38 = arith.constant 0 : index
    %10 = vector.load %arg1[%c0_35, %c0_36, %c1_37, %c0_38] : memref<4x1x16x16xf32, #tpu.memory_space<vmem>>, vector<4x1x1x2xf32>
    %c0_39 = arith.constant 0 : index
    %c0_40 = arith.constant 0 : index
    %c0_41 = arith.constant 0 : index
    %c18_42 = arith.constant 18 : index
    %11 = vector.load %arg2[%c0_39, %c0_40, %c0_41, %c18_42] : memref<4x1x18x20xf32, #tpu.memory_space<vmem>>, vector<4x1x1x2xf32>
    tpu.vector_store %arg2[%c0_39, %c0_40, %c0_41, %c18_42], %10 {strides = array<i32>} : memref<4x1x18x20xf32, #tpu.memory_space<vmem>>, vector<4x1x1x2xf32>,
    %c0_43 = arith.constant 0 : index
    %c0_44 = arith.constant 0 : index
    %c14_45 = arith.constant 14 : index
    %c14_46 = arith.constant 14 : index
    %12 = vector.load %arg1[%c0_43, %c0_44, %c14_45, %c14_46] : memref<4x1x16x16xf32, #tpu.memory_space<vmem>>, vector<4x1x1x2xf32>
    %c0_47 = arith.constant 0 : index
    %c0_48 = arith.constant 0 : index
    %c17 = arith.constant 17 : index
    %c0_49 = arith.constant 0 : index
    %13 = vector.load %arg2[%c0_47, %c0_48, %c17, %c0_49] : memref<4x1x18x20xf32, #tpu.memory_space<vmem>>, vector<4x1x1x2xf32>
    tpu.vector_store %arg2[%c0_47, %c0_48, %c17, %c0_49], %12 {strides = array<i32>} : memref<4x1x18x20xf32, #tpu.memory_space<vmem>>, vector<4x1x1x2xf32>,
    %c0_50 = arith.constant 0 : index
    %c0_51 = arith.constant 0 : index
    %c14_52 = arith.constant 14 : index
    %c0_53 = arith.constant 0 : index
    %14 = vector.load %arg1[%c0_50, %c0_51, %c14_52, %c0_53] : memref<4x1x16x16xf32, #tpu.memory_space<vmem>>, vector<4x1x1x16xf32>
    %c0_54 = arith.constant 0 : index
    %c0_55 = arith.constant 0 : index
    %c17_56 = arith.constant 17 : index
    %c2_57 = arith.constant 2 : index
    %15 = vector.load %arg2[%c0_54, %c0_55, %c17_56, %c2_57] : memref<4x1x18x20xf32, #tpu.memory_space<vmem>>, vector<4x1x1x16xf32>
    tpu.vector_store %arg2[%c0_54, %c0_55, %c17_56, %c2_57], %14 {strides = array<i32>} : memref<4x1x18x20xf32, #tpu.memory_space<vmem>>, vector<4x1x1x16xf32>,
    %c0_58 = arith.constant 0 : index
    %c0_59 = arith.constant 0 : index
    %c14_60 = arith.constant 14 : index
    %c0_61 = arith.constant 0 : index
    %16 = vector.load %arg1[%c0_58, %c0_59, %c14_60, %c0_61] : memref<4x1x16x16xf32, #tpu.memory_space<vmem>>, vector<4x1x1x2xf32>
    %c0_62 = arith.constant 0 : index
    %c0_63 = arith.constant 0 : index
    %c17_64 = arith.constant 17 : index
    %c18_65 = arith.constant 18 : index
    %17 = vector.load %arg2[%c0_62, %c0_63, %c17_64, %c18_65] : memref<4x1x18x20xf32, #tpu.memory_space<vmem>>, vector<4x1x1x2xf32>
    tpu.vector_store %arg2[%c0_62, %c0_63, %c17_64, %c18_65], %16 {strides = array<i32>} : memref<4x1x18x20xf32, #tpu.memory_space<vmem>>, vector<4x1x1x2xf32>,
    return
  }
  func.func @transform_0(%arg0: i32) -> (i32, i32, i32, i32) {
    %c0_i32 = arith.constant 0 : i32
    %c0_i32_0 = arith.constant 0 : i32
    %c0_i32_1 = arith.constant 0 : i32
    %c0_i32_2 = arith.constant 0 : i32
    return %arg0, %c0_i32, %c0_i32_0, %c0_i32_1 : i32, i32, i32, i32
  }
  func.func @transform_1(%arg0: i32) -> (i32, i32, i32, i32) {
    %c0_i32 = arith.constant 0 : i32
    %c0_i32_0 = arith.constant 0 : i32
    %c0_i32_1 = arith.constant 0 : i32
    %c0_i32_2 = arith.constant 0 : i32
    return %arg0, %c0_i32, %c0_i32_0, %c0_i32_1 : i32, i32, i32, i32
  }
}

</mosaic_0001>

<bundles_post_ra>
// kernel: tpu_custom_call.1
= control target key start
LH: loop header
LB: loop body
LE: loop exit
PB: predicated region body
PF: predicated region fallthrough
CT: control target
= control target key end

     0   :  { %6 = vsyncpa [#allocation3], 0  ;;  %s934_s0 = inlined_call_operand.hbm [shape: f32[8,1,16,16], index: 0, kind: input, shape index: {}]   ;;  %s935_s1 = inlined_call_operand.vmem [shape: f32[8,1,18,20], index: 1, kind: output, shape index: {}]  }
   0x1   :  { %8 = vsyncpa [#allocation3 + $0x1], 0  ;;  %s648_s6 = smov 0   ;;  %s650_s7 = smov 0  }
   0x2   :  { %s652_s8 = smov 0   ;;  %s654_s9 = smov 0  }
   0x3 LB: > { %s505_s10 = sadd.s32 4294967295, %s630_s9   ;;  %s668_s11 = sadd.s32 1, %s630_s9   ;;  %s630_s9 = sphi %s654_s9, %s942_s9   ;;  %s626_s8 = sphi %s652_s8, %s941_s8   ;;  %s622_s7 = sphi %s650_s7, %s940_s7   ;;  %s618_s6 = sphi %s648_s6, %s939_s6  }
   0x4   : > { %s18_s12 = ssub.s32 %s630_s9, %s668_s11  ;;  %s21_s13 = sadd.s32 1, %s626_s8 }
   0x5   : > { %p19_p0 = scmp.eq.s32.totalorder %s18_s12, 0  ;;  %p28_p1 = scmp.ne.s32.totalorder %s626_s8, %s622_s7 }
   0x6   : > { %p29_p2 = scmp.eq.s32.totalorder %s630_s9, 0  ;;  %p34_p3 = scmp.ne.s32.totalorder %s622_s7, %s618_s6 }
   0x7   : > { %s678_s14 = scalar_select %p19_p0, %s626_s8, %s21_s13  }
   0x8   : > { %p30_p4 = por %p29_p2, %p28_p1  ;;  %p35_p5 = scmp.eq.s32.totalorder %s505_s10, 0 }
   0x9   : > { %p528_p6 = scmp.lt.s32.totalorder %s630_s9, 2  ;;  %s84_s16 = sand.u32 1, %s626_s8  }
   0xa   : > { %p683_p7 = por %p35_p5, %p34_p3  ;;  %s509_s17 = sshll.u32 %s84_s16, 6 }
   0xb   : > { %s520_s18 = sshll.u32 %s630_s9, 10  ;;  %s88_s22 = scalar_lea.vmem [#allocation2], %s509_s17 }
   0xc   : > { %s692_s21 = scalar_lea.hbm %s934_s0, %s520_s18  ;;  %s96_s23 = sshll.u32 %s88_s22, 4  ;;  %s694_s23 = int_to_ptr.vmem [resolvable:$true] %s96_s23 }
   0xd   : > { %p696_p8 = pnand %p528_p6, %p30_p4  ;;  %s701_s25 = scalar_lea.sflag [#allocation3], %s84_s16 }
   0xe   : > { %s566_s26 = scalar_lea.hbm %s692_s21, 1024  ;;  %s571_s29 = scalar_lea.hbm %s934_s0, 2048 }
   0xf   : > { %p567_p10 = scmp.ne.s32.totalorder %s692_s21, %s566_s26  ;;  %p568_p11 = pneg %p696_p8 }
  0x10   : > { %p572_p0 = scmp.lt.u32.totalorder %s692_s21, %s934_s0  ;;  %p573_p1 = scmp.lt.u32.totalorder %s571_s29, %s566_s26 }
  0x11   : > { %p569_p12 = pnand %p568_p11, %p567_p10  ;;  %p575_p3 = scmp.lt.u32.totalorder %s566_s26, %s692_s21 }
  0x12   : > { %p574_p2 = por %p573_p1, %p572_p0 }
  0x13   : > { %p570_p13 = pneg %p569_p12 }
  0x14   : > { %p576_p4 = por %p575_p3, %p574_p2 }
  0x16   : > { %p577_p5 = pnand %p576_p4, %p570_p13 }
  0x18   : > { %580 = shalt.err (!%p577_p5)
}
  0x19   : > { %s581_s3 = scalar_lea.vmem %s694_s23, 1024  ;;  %s632_s4 = smov [#allocation2]  }
  0x1a   : > { %p582_p6 = scmp.ne.s32.totalorder %s694_s23, %s581_s3  ;;  %s586_s5 = sshll.u32 %s632_s4, 4  ;;  %s587_s5 = int_to_ptr.vmem [resolvable:$false] %s586_s5 }
  0x1b   : > { %s588_s6 = scalar_lea.vmem %s587_s5, 2048  ;;  %p589_p9 = scmp.lt.s32.totalorder %s694_s23, %s587_s5 }
  0x1c   : > { %p584_p10 = pnand %p582_p6, %p568_p11  ;;  %p590_p0 = scmp.lt.s32.totalorder %s588_s6, %s581_s3 }
  0x1e   : > { %p585_p12 = pneg %p584_p10  ;;  %p591_p1 = por %p590_p0, %p589_p9 }
  0x20   : > { %p592_p2 = pnand %p591_p1, %p585_p12 }
  0x22   : > { %595 = shalt.err (!%p592_p2)
}
  0x23   : > { %s633_s12 = smov 128   ;;  %s634_s13 = smov 8  }
  0x24   : > { %527 = dma.hbm_to_vmem [thread:$0]  (!%p696_p8), %s692_s21, 1024, %s694_s23, %s701_s25, %s633_s12, %s633_s12, %s634_s13  }
  0x25   : > { %p104_p11 = scmp.lt.s32.totalorder %s630_s9, 3  ;;  %p938_p13 = scmp.ge.s32.totalorder %s630_s9, 1 }
  0x27   : > { %p105_p3 = pnand %p938_p13, %p104_p11 }
  0x28   : > { %s110_s16 = sand.u32 (!%p105_p3), 1, %s622_s7  }
  0x29   : > { %108 = sbr.rel (%p105_p3) target bundleno = 258 (0x102), region = 24  ;;  %s514_s17 = sshll.u32 (!%p105_p3), %s110_s16, 6 }
  0x2a   : > { %s111_s18 = scalar_lea.sflag (!%p105_p3), [#allocation3], %s110_s16  ;;  %s733_s19 = scalar_lea.vmem (!%p105_p3), [#allocation2], %s514_s17 }
  0x30   : > { %613 = dma.done.wait (%p683_p7), %s111_s18, 1024  }
  0x31   : > { %615 = vsyncadd (%p683_p7), %s111_s18, 4294966272  ;;  %v740_v0 = vld [vmem:[%s733_s19 + $0x10] sm:$0xff]  ;;  %v142_v1 = vld [vmem:[%s733_s19] sm:$0xff]  ;;  %s635_s20 = smov 114   ;;  %s636_s15 = smov 2   ;;  %vm182_vm0 = vcmask 15360  }
  0x32   : > { %162 = vrot.lane.b32.xlu1 %v740_v0, %s635_s20  ;;  %158 = vrot.lane.b32.xlu0 %v142_v1, %s635_s20  ;;  %v145_v2 = vld [vmem:[%s733_s19 + $0x18] sm:$0xff]  ;;  %v143_v3 = vld [vmem:[%s733_s19 + $0x8] sm:$0xff]  ;;  %s637_s21 = smov 18   ;;  %s515_s22 = sshll.u32 %s505_s10, 2  ;;  %vm231_vm1 = vcmask 146448   ;;  %vm309_vm2 = vcmask 8192  }
  0x33   : > { %v147_v4 = vld [vmem:[%s733_s19 + $0x28] sm:$0xff]  ;;  %v146_v5 = vld [vmem:[%s733_s19 + $0x20] sm:$0xff]  ;;  %v755_v6 = vld [vmem:[%s733_s19 + $0x38] sm:$0xff]  ;;  %p136_p7 = scmp.lt.s32.totalorder %s515_s22, 7  ;;  %vm334_vm3 = vcmask 139280   ;;  %vm280_vm4 = vcmask 162960  }
  0x34   : > { %v758_v7 = vld [vmem:[%s733_s19 + $0x30] sm:$0xff]  ;;  %v364_v8 = vld [vmem:[%s733_s19 + $0xe] sm:$0x1]  ;;  %v289_v9 = vld [vmem:[%s733_s19 + $0x1] sm:$0x1]  ;;  %vm359_vm5 = vcmask 155792  }
  0x35   : > { %v365_v10 = vld [vmem:[%s733_s19 + $0x1e] sm:$0x1]  ;;  %v290_v11 = vld [vmem:[%s733_s19 + $0x11] sm:$0x1]  ;;  %v366_v12 = vld [vmem:[%s733_s19 + $0x2e] sm:$0x1] }
  0x36   : > { %164 = vrot.lane.b32.xlu1 %v145_v2, %s635_s20  ;;  %160 = vrot.lane.b32.xlu0 %v143_v3, %s635_s20  ;;  %v291_v13 = vld [vmem:[%s733_s19 + $0x21] sm:$0x1]  ;;  %v367_v14 = vld [vmem:[%s733_s19 + $0x3e] sm:$0x1]  ;;  %s944_s22 = smov (!%p136_p7, %s515_s22), 7 }
  0x37   : > { %v292_v15 = vld [vmem:[%s733_s19 + $0x31] sm:$0x1]  ;;  %v388_v16 = vld [vmem:[%s733_s19 + $0xe] sm:$0x1]  ;;  %v314_v17 = vld [vmem:[%s733_s19 + $0x1] sm:$0x1] }
  0x38   : > { %v389_v18 = vld [vmem:[%s733_s19 + $0x1e] sm:$0x1]  ;;  %v315_v19 = vld [vmem:[%s733_s19 + $0x11] sm:$0x1]  ;;  %v390_v20 = vld [vmem:[%s733_s19 + $0x2e] sm:$0x1] }
  0x39   : > { %v316_v21 = vld [vmem:[%s733_s19 + $0x21] sm:$0x1]  ;;  %v391_v22 = vld [vmem:[%s733_s19 + $0x3e] sm:$0x1]  ;;  %v317_v23 = vld [vmem:[%s733_s19 + $0x31] sm:$0x1] }
  0x3a   : > { %168 = vrot.lane.b32.xlu1 %v147_v4, %s635_s20  ;;  %166 = vrot.lane.b32.xlu0 %v146_v5, %s635_s20  ;;  %v412_v24 = vld [vmem:[%s733_s19 + $0xe] sm:$0x1]  ;;  %v339_v25 = vld [vmem:[%s733_s19 + $0x1] sm:$0x1]  ;;  %s521_s23 = smul.u32 24, %s944_s22 }
  0x3b   : > { %v413_v26 = vld [vmem:[%s733_s19 + $0x1e] sm:$0x1]  ;;  %v340_v27 = vld [vmem:[%s733_s19 + $0x11] sm:$0x1]  ;;  %v414_v28 = vld [vmem:[%s733_s19 + $0x2e] sm:$0x1] }
  0x3c   : > { %v341_v29 = vld [vmem:[%s733_s19 + $0x21] sm:$0x1]  ;;  %v415_v30 = vld [vmem:[%s733_s19 + $0x3e] sm:$0x1]  ;;  %v342_v31 = vld [vmem:[%s733_s19 + $0x31] sm:$0x1]  ;;  %s823_s26 = scalar_lea.vmem %s935_s1, %s521_s23 }
  0x3e   : > { %172 = vrot.lane.b32.xlu1 %v755_v6, %s635_s20  ;;  %170 = vrot.lane.b32.xlu0 %v758_v7, %s635_s20 }
  0x42   : > { %209 = vrot.lane.b32.xlu1 %v143_v3, %s636_s15  ;;  %207 = vrot.lane.b32.xlu0 %v142_v1, %s636_s15 }
  0x46   : > { %213 = vrot.lane.b32.xlu1 %v145_v2, %s636_s15  ;;  %211 = vrot.lane.b32.xlu0 %v740_v0, %s636_s15 }
  0x4a   : > { %217 = vrot.lane.b32.xlu1 %v147_v4, %s636_s15  ;;  %215 = vrot.lane.b32.xlu0 %v146_v5, %s636_s15 }
  0x4e   : > { %372 = vrot.lane.b32.xlu1 %v364_v8, %s635_s20  ;;  %297 = vrot.lane.b32.xlu0 %v289_v9, %s635_s20 }
  0x52   : > { %374 = vrot.lane.b32.xlu1 %v365_v10, %s635_s20  ;;  %299 = vrot.lane.b32.xlu0 %v290_v11, %s635_s20 }
  0x56   : > { %376 = vrot.lane.b32.xlu1 %v366_v12, %s635_s20  ;;  %301 = vrot.lane.b32.xlu0 %v291_v13, %s635_s20 }
  0x5a   : > { %378 = vrot.lane.b32.xlu1 %v367_v14, %s635_s20  ;;  %303 = vrot.lane.b32.xlu0 %v292_v15, %s635_s20 }
  0x5e   : > { %396 = vrot.lane.b32.xlu1 %v388_v16, %s636_s15  ;;  %322 = vrot.lane.b32.xlu0 %v314_v17, %s636_s15 }
  0x62   : > { %398 = vrot.lane.b32.xlu1 %v389_v18, %s636_s15  ;;  %324 = vrot.lane.b32.xlu0 %v315_v19, %s636_s15 }
  0x66   : > { %400 = vrot.lane.b32.xlu1 %v390_v20, %s636_s15  ;;  %326 = vrot.lane.b32.xlu0 %v316_v21, %s636_s15 }
  0x6a   : > { %221 = vrot.lane.b32.xlu1 %v755_v6, %s636_s15  ;;  %219 = vrot.lane.b32.xlu0 %v758_v7, %s636_s15 }
  0x6e   : > { %402 = vrot.lane.b32.xlu1 %v391_v22, %s636_s15  ;;  %328 = vrot.lane.b32.xlu0 %v317_v23, %s636_s15 }
  0x72   : > { %258 = vrot.lane.b32.xlu1 %v143_v3, %s637_s21  ;;  %256 = vrot.lane.b32.xlu0 %v142_v1, %s637_s21 }
  0x76   : > { %420 = vrot.lane.b32.xlu1 %v412_v24, %s637_s21  ;;  %347 = vrot.lane.b32.xlu0 %v339_v25, %s637_s21 }
  0x7a   : > { %262 = vrot.lane.b32.xlu1 %v145_v2, %s637_s21  ;;  %260 = vrot.lane.b32.xlu0 %v740_v0, %s637_s21 }
  0x7e   : > { %422 = vrot.lane.b32.xlu1 %v413_v26, %s637_s21  ;;  %349 = vrot.lane.b32.xlu0 %v340_v27, %s637_s21 }
  0x82   : > { %266 = vrot.lane.b32.xlu1 %v147_v4, %s637_s21  ;;  %264 = vrot.lane.b32.xlu0 %v146_v5, %s637_s21 }
  0x86   : > { %424 = vrot.lane.b32.xlu1 %v414_v28, %s637_s21  ;;  %351 = vrot.lane.b32.xlu0 %v341_v29, %s637_s21 }
  0x8a   : > { %270 = vrot.lane.b32.xlu1 %v755_v6, %s637_s21  ;;  %268 = vrot.lane.b32.xlu0 %v758_v7, %s637_s21 }
  0x8e   : > { %426 = vrot.lane.b32.xlu1 %v415_v30, %s637_s21  ;;  %353 = vrot.lane.b32.xlu0 %v342_v31, %s637_s21 }
  0xa4   : > { %v163_v32 = vpop.permute.xlu1 %162  ;;  %v159_v33 = vpop.permute.xlu0 %158 }
  0xa5   : > { %183 = vst.msk [vmem:[%s823_s26 + $0x1] sm:$0xff] %vm182_vm0, %v159_v33  ;;  %185 = vst.msk [vmem:[%s823_s26 + $0x19] sm:$0xff] %vm182_vm0, %v163_v32 }
  0xa8   : > { %v165_v34 = vpop.permute.xlu1 %164  ;;  %v161_v35 = vpop.permute.xlu0 %160 }
  0xa9   : > { %184 = vst.msk [vmem:[%s823_s26 + $0x9] sm:$0xff] %vm182_vm0, %v161_v35  ;;  %186 = vst.msk [vmem:[%s823_s26 + $0x21] sm:$0xff] %vm182_vm0, %v165_v34 }
  0xac   : > { %v169_v36 = vpop.permute.xlu1 %168  ;;  %v167_v37 = vpop.permute.xlu0 %166 }
  0xad   : > { %188 = vst.msk [vmem:[%s823_s26 + $0x39] sm:$0xff] %vm182_vm0, %v169_v36  ;;  %187 = vst.msk [vmem:[%s823_s26 + $0x31] sm:$0xff] %vm182_vm0, %v167_v37 }
  0xb0   : > { %v173_v38 = vpop.permute.xlu1 %172  ;;  %v171_v39 = vpop.permute.xlu0 %170 }
  0xb1   : > { %190 = vst.msk [vmem:[%s823_s26 + $0x51] sm:$0xff] %vm182_vm0, %v173_v38  ;;  %189 = vst.msk [vmem:[%s823_s26 + $0x49] sm:$0xff] %vm182_vm0, %v171_v39 }
  0xb4   : > { %v210_v40 = vpop.permute.xlu1 %209  ;;  %v208_v41 = vpop.permute.xlu0 %207 }
  0xb5   : > { %233 = vst.msk [vmem:[%s823_s26 + $0x9] sm:$0xff] %vm231_vm1, %v210_v40  ;;  %232 = vst.msk [vmem:[%s823_s26 + $0x1] sm:$0xff] %vm231_vm1, %v208_v41 }
  0xb8   : > { %v214_v42 = vpop.permute.xlu1 %213  ;;  %v212_v43 = vpop.permute.xlu0 %211 }
  0xb9   : > { %235 = vst.msk [vmem:[%s823_s26 + $0x21] sm:$0xff] %vm231_vm1, %v214_v42  ;;  %234 = vst.msk [vmem:[%s823_s26 + $0x19] sm:$0xff] %vm231_vm1, %v212_v43 }
  0xbc   : > { %v218_v44 = vpop.permute.xlu1 %217  ;;  %v216_v45 = vpop.permute.xlu0 %215 }
  0xbd   : > { %237 = vst.msk [vmem:[%s823_s26 + $0x39] sm:$0xff] %vm231_vm1, %v218_v44  ;;  %236 = vst.msk [vmem:[%s823_s26 + $0x31] sm:$0xff] %vm231_vm1, %v216_v45 }
  0xc0   : > { %v373_v46 = vpop.permute.xlu1 %372  ;;  %v298_v47 = vpop.permute.xlu0 %297 }
  0xc1   : > { %384 = vst.msk [vmem:[%s823_s26 + $0x11] sm:$0x1] %vm309_vm2, %v373_v46  ;;  %310 = vst.msk [vmem:[%s823_s26] sm:$0x1] %vm309_vm2, %v298_v47 }
  0xc4   : > { %v375_v48 = vpop.permute.xlu1 %374  ;;  %v300_v49 = vpop.permute.xlu0 %299 }
  0xc5   : > { %385 = vst.msk [vmem:[%s823_s26 + $0x29] sm:$0x1] %vm309_vm2, %v375_v48  ;;  %311 = vst.msk [vmem:[%s823_s26 + $0x18] sm:$0x1] %vm309_vm2, %v300_v49 }
  0xc8   : > { %v377_v50 = vpop.permute.xlu1 %376  ;;  %v302_v51 = vpop.permute.xlu0 %301 }
  0xc9   : > { %386 = vst.msk [vmem:[%s823_s26 + $0x41] sm:$0x1] %vm309_vm2, %v377_v50  ;;  %312 = vst.msk [vmem:[%s823_s26 + $0x30] sm:$0x1] %vm309_vm2, %v302_v51 }
  0xcc   : > { %v379_v52 = vpop.permute.xlu1 %378  ;;  %v304_v53 = vpop.permute.xlu0 %303 }
  0xcd   : > { %387 = vst.msk [vmem:[%s823_s26 + $0x59] sm:$0x1] %vm309_vm2, %v379_v52  ;;  %313 = vst.msk [vmem:[%s823_s26 + $0x48] sm:$0x1] %vm309_vm2, %v304_v53 }
  0xd0   : > { %v397_v54 = vpop.permute.xlu1 %396  ;;  %v323_v55 = vpop.permute.xlu0 %322 }
  0xd1   : > { %408 = vst.msk [vmem:[%s823_s26 + $0x11] sm:$0x1] %vm334_vm3, %v397_v54  ;;  %335 = vst.msk [vmem:[%s823_s26] sm:$0x1] %vm334_vm3, %v323_v55 }
  0xd4   : > { %v399_v56 = vpop.permute.xlu1 %398  ;;  %v325_v57 = vpop.permute.xlu0 %324 }
  0xd5   : > { %409 = vst.msk [vmem:[%s823_s26 + $0x29] sm:$0x1] %vm334_vm3, %v399_v56  ;;  %336 = vst.msk [vmem:[%s823_s26 + $0x18] sm:$0x1] %vm334_vm3, %v325_v57 }
  0xd8   : > { %v401_v58 = vpop.permute.xlu1 %400  ;;  %v327_v59 = vpop.permute.xlu0 %326 }
  0xd9   : > { %410 = vst.msk [vmem:[%s823_s26 + $0x41] sm:$0x1] %vm334_vm3, %v401_v58  ;;  %337 = vst.msk [vmem:[%s823_s26 + $0x30] sm:$0x1] %vm334_vm3, %v327_v59 }
  0xdc   : > { %v222_v60 = vpop.permute.xlu1 %221  ;;  %v220_v61 = vpop.permute.xlu0 %219 }
  0xdd   : > { %239 = vst.msk [vmem:[%s823_s26 + $0x51] sm:$0xff] %vm231_vm1, %v222_v60  ;;  %238 = vst.msk [vmem:[%s823_s26 + $0x49] sm:$0xff] %vm231_vm1, %v220_v61 }
  0xe0   : > { %v403_v62 = vpop.permute.xlu1 %402  ;;  %v329_v63 = vpop.permute.xlu0 %328 }
  0xe1   : > { %411 = vst.msk [vmem:[%s823_s26 + $0x59] sm:$0x1] %vm334_vm3, %v403_v62  ;;  %338 = vst.msk [vmem:[%s823_s26 + $0x48] sm:$0x1] %vm334_vm3, %v329_v63 }
  0xe4   : > { %v259_v0 = vpop.permute.xlu1 %258  ;;  %v257_v1 = vpop.permute.xlu0 %256 }
  0xe5   : > { %282 = vst.msk [vmem:[%s823_s26 + $0x9] sm:$0xff] %vm280_vm4, %v259_v0  ;;  %281 = vst.msk [vmem:[%s823_s26 + $0x1] sm:$0xff] %vm280_vm4, %v257_v1 }
  0xe8   : > { %v421_v2 = vpop.permute.xlu1 %420  ;;  %v348_v3 = vpop.permute.xlu0 %347 }
  0xe9   : > { %432 = vst.msk [vmem:[%s823_s26 + $0x11] sm:$0x1] %vm359_vm5, %v421_v2  ;;  %360 = vst.msk [vmem:[%s823_s26] sm:$0x1] %vm359_vm5, %v348_v3 }
  0xec   : > { %v263_v4 = vpop.permute.xlu1 %262  ;;  %v261_v5 = vpop.permute.xlu0 %260 }
  0xed   : > { %284 = vst.msk [vmem:[%s823_s26 + $0x21] sm:$0xff] %vm280_vm4, %v263_v4  ;;  %283 = vst.msk [vmem:[%s823_s26 + $0x19] sm:$0xff] %vm280_vm4, %v261_v5 }
  0xf0   : > { %v423_v6 = vpop.permute.xlu1 %422  ;;  %v350_v7 = vpop.permute.xlu0 %349 }
  0xf1   : > { %433 = vst.msk [vmem:[%s823_s26 + $0x29] sm:$0x1] %vm359_vm5, %v423_v6  ;;  %361 = vst.msk [vmem:[%s823_s26 + $0x18] sm:$0x1] %vm359_vm5, %v350_v7 }
  0xf4   : > { %v267_v8 = vpop.permute.xlu1 %266  ;;  %v265_v9 = vpop.permute.xlu0 %264 }
  0xf5   : > { %286 = vst.msk [vmem:[%s823_s26 + $0x39] sm:$0xff] %vm280_vm4, %v267_v8  ;;  %285 = vst.msk [vmem:[%s823_s26 + $0x31] sm:$0xff] %vm280_vm4, %v265_v9 }
  0xf8   : > { %v425_v10 = vpop.permute.xlu1 %424  ;;  %v352_v11 = vpop.permute.xlu0 %351 }
  0xf9   : > { %434 = vst.msk [vmem:[%s823_s26 + $0x41] sm:$0x1] %vm359_vm5, %v425_v10  ;;  %362 = vst.msk [vmem:[%s823_s26 + $0x30] sm:$0x1] %vm359_vm5, %v352_v11 }
  0xfc   : > { %v271_v12 = vpop.permute.xlu1 %270  ;;  %v269_v13 = vpop.permute.xlu0 %268 }
  0xfd   : > { %288 = vst.msk [vmem:[%s823_s26 + $0x51] sm:$0xff] %vm280_vm4, %v271_v12  ;;  %287 = vst.msk [vmem:[%s823_s26 + $0x49] sm:$0xff] %vm280_vm4, %v269_v13 }
 0x100   : > { %v427_v14 = vpop.permute.xlu1 %426  ;;  %v354_v15 = vpop.permute.xlu0 %353 }
 0x101   : > { %435 = vst.msk [vmem:[%s823_s26 + $0x59] sm:$0x1] %vm359_vm5, %v427_v14  ;;  %363 = vst.msk [vmem:[%s823_s26 + $0x48] sm:$0x1] %vm359_vm5, %v354_v15 }
 0x102 PF: > { %p11_p8 = scmp.ge.s32.totalorder %s668_s11, 4   ;;  %s939_s6 = smov %s622_s7 }
 0x103   : > { %s940_s7 = smov %s626_s8  ;;  %s941_s8 = smov %s678_s14 }
 0x104   : > { %s942_s9 = smov %s668_s11  ;;  %13 = sbr.rel (!%p11_p8) target bundleno = 3 (0x3), region = 64 }
 0x10b   :  { %460 = vsyncpa [#allocation3], 1 }
 0x10c   :  { %462 = vsyncpa [#allocation3 + $0x1], 1 }

</bundles_post_ra>
